<compile_context>
chip_gen: v7x
topology: tpu7x:2x2x1
jax: 0.10.0
libtpu: 0.0.40
codegen_flags: <defaults>
</compile_context>

<pallas_src>
import jax
import jax.numpy as jnp
from jax.experimental import pallas as pl
from jax.experimental.pallas import tpu as pltpu


def _sigmoid(t):
    # Explicit form: exp goes to the EUP, divide/reciprocal is cheap.
    return 1.0 / (1.0 + jnp.exp(-t))


def _se_kernel(x_ref, w1_ref, b1_ref, w2_ref, b2_ref, o_ref):
    # x_ref/o_ref: (C, HW)   w1: (Cr, C)  b1: (Cr, 1)  w2: (C, Cr)  b2: (C, 1)
    xb = x_ref[...].astype(jnp.float32)                         # (C, HW)

    # Squeeze: global average pool over the spatial (lane) axis.
    pooled = jnp.mean(xb, axis=-1, keepdims=True)               # (C, 1)

    # fc1 (1x1 conv) in native (Cr, C) layout — no transpose needed.
    h = jnp.dot(w1_ref[...], pooled,
                preferred_element_type=jnp.float32) + b1_ref[...]   # (Cr, 1)
    h = h * _sigmoid(h)                                          # SiLU

    # fc2 (1x1 conv) in native (C, Cr) layout.
    s = jnp.dot(w2_ref[...], h,
                preferred_element_type=jnp.float32) + b2_ref[...]   # (C, 1)
    s = _sigmoid(s)                                              # excite gate

    # Excite: per-channel rescale, scale broadcast along the spatial lanes.
    o_ref[...] = (xb * s).astype(o_ref.dtype)


def squeeze_excite_af(x, w1, b1, w2, b2):
    """x: (B, C, H, W); w1: (Cr, C); b1: (Cr,); w2: (C, Cr); b2: (C,)."""
    B, C, H, W = x.shape
    HW = H * W
    Cr = w1.shape[0]

    x3 = x.reshape(B, C, HW)          # free row-major view, keeps HW lane-dense
    b1c = b1.reshape(Cr, 1)
    b2c = b2.reshape(C, 1)

    itemsize = jnp.dtype(x.dtype).itemsize
    cost = pl.CostEstimate(
        flops=2 * B * C * HW + 4 * B * C * Cr,          # pool + rescale + FCs
        transcendentals=B * (C + Cr),                   # exp per gate element
        bytes_accessed=2 * B * C * HW * itemsize + (2 * C * Cr + C + Cr) * 4,
    )

    # Per-block VMEM: (C * HW * itemsize) for x and for the output, each
    # double-buffered — fine for typical SE shapes; for very large C*H*W a
    # spatially-tiled two-pass variant would be needed.
    out = pl.pallas_call(
        _se_kernel,
        out_shape=jax.ShapeDtypeStruct((B, C, HW), x.dtype),
        grid=(B,),
        in_specs=[
            pl.BlockSpec((None, C, HW), lambda b: (b, 0, 0)),  # x[b] tile
            pl.BlockSpec((Cr, C), lambda b: (0, 0)),           # resident weights
            pl.BlockSpec((Cr, 1), lambda b: (0, 0)),
            pl.BlockSpec((C, Cr), lambda b: (0, 0)),
            pl.BlockSpec((C, 1), lambda b: (0, 0)),
        ],
        out_specs=pl.BlockSpec((None, C, HW), lambda b: (b, 0, 0)),
        compiler_params=pltpu.CompilerParams(
            dimension_semantics=("parallel",),   # batch steps independent
        ),
        cost_estimate=cost,
    )(x3, w1, b1c, w2, b2c)
    return out.reshape(B, C, H, W)


if __name__ == "__main__":
    B, C, H, W = 2, 8, 16, 16
    reduction = 4
    Cr = C // reduction

    key = jax.random.PRNGKey(0)
    kx, kw1, kb1, kw2, kb2 = jax.random.split(key, 5)

    x = jax.random.normal(kx, (B, C, H, W), jnp.float32)
    # 1x1 convs are per-pixel linear layers; store weights as 2-D matrices
    # (same values as Conv2d weight[..., 0, 0]).
    bound1 = 1.0 / (C ** 0.5)
    w1 = jax.random.uniform(kw1, (Cr, C), jnp.float32, -bound1, bound1)
    b1 = jax.random.uniform(kb1, (Cr,), jnp.float32, -bound1, bound1)
    bound2 = 1.0 / (Cr ** 0.5)
    w2 = jax.random.uniform(kw2, (C, Cr), jnp.float32, -bound2, bound2)
    b2 = jax.random.uniform(kb2, (C,), jnp.float32, -bound2, bound2)

    out = squeeze_excite_af(x, w1, b1, w2, b2)
    out = jax.block_until_ready(out)

    # Pure-JAX reference of the SqueezeExciteAF forward pass.
    pooled = jnp.mean(x, axis=(2, 3))                    # (B, C)
    h = pooled @ w1.T + b1                               # fc1
    h = h * jax.nn.sigmoid(h)                            # SiLU
    s = jax.nn.sigmoid(h @ w2.T + b2)                    # fc2 + sigmoid
    ref = x * s[:, :, None, None]

    assert out.shape == (B, C, H, W)
    assert jnp.allclose(out, ref, atol=1e-4, rtol=1e-4), "mismatch vs reference"
    print("KERNEL_OK")
</pallas_src>

<mosaic_0001>
module attributes {stable_mosaic.version = 11 : i64} {
  func.func @_se_kernel(%arg0: i32, %arg1: memref<1x8x256xf32, #tpu.memory_space<vmem>>, %arg2: memref<2x8xf32, #tpu.memory_space<vmem>>, %arg3: memref<2x1xf32, #tpu.memory_space<vmem>>, %arg4: memref<8x2xf32, #tpu.memory_space<vmem>>, %arg5: memref<8x1xf32, #tpu.memory_space<vmem>>, %arg6: memref<1x8x256xf32, #tpu.memory_space<vmem>>) attributes {dimension_semantics = [#tpu.dimension_semantics<parallel>], iteration_bounds = array<i64: 2>, scalar_prefetch = 0 : i64, scratch_operands = 0 : i64, tpu.core_type = #tpu.core_type<tc>, window_params = [{transform_indices = @transform_0, window_bounds = array<i64: 1, 8, 256>}, {pipeline_mode = #tpu.pipeline_mode<synchronous>, transform_indices = @transform_1, window_bounds = array<i64: 2, 8>}, {pipeline_mode = #tpu.pipeline_mode<synchronous>, transform_indices = @transform_2, window_bounds = array<i64: 2, 1>}, {pipeline_mode = #tpu.pipeline_mode<synchronous>, transform_indices = @transform_3, window_bounds = array<i64: 8, 2>}, {pipeline_mode = #tpu.pipeline_mode<synchronous>, transform_indices = @transform_4, window_bounds = array<i64: 8, 1>}, {transform_indices = @transform_5, window_bounds = array<i64: 1, 8, 256>}]} {
    %c0 = arith.constant 0 : index
    %c0_0 = arith.constant 0 : index
    %c0_1 = arith.constant 0 : index
    %0 = vector.load %arg1[%c0, %c0_0, %c0_1] : memref<1x8x256xf32, #tpu.memory_space<vmem>>, vector<1x8x256xf32>
    %1 = vector.shape_cast %0 : vector<1x8x256xf32> to vector<8x256xf32>
    %cst = arith.constant dense<0.000000e+00> : vector<8xf32>
    %2 = vector.multi_reduction <add>, %1, %cst [1] : vector<8x256xf32> to vector<8xf32>
    %3 = vector.shape_cast %2 : vector<8xf32> to vector<8x1xf32>
    %cst_2 = arith.constant 2.560000e+02 : f32
    %4 = vector.broadcast %cst_2 : f32 to vector<8x1xf32>
    %5 = arith.divf %3, %4 : vector<8x1xf32>
    %c0_3 = arith.constant 0 : index
    %c0_4 = arith.constant 0 : index
    %6 = vector.load %arg2[%c0_3, %c0_4] : memref<2x8xf32, #tpu.memory_space<vmem>>, vector<2x8xf32>
    %cst_5 = arith.constant dense<0.000000e+00> : vector<2x1xf32>
    %7 = tpu.matmul %6, %5, %cst_5 {dimension_numbers = #tpu.dot_dimension_numbers<[1], [0], [0], [1], [0, 0, 1, 1], [], []>} : vector<2x8xf32>, vector<8x1xf32>, vector<2x1xf32> -> vector<2x1xf32>
    %c0_6 = arith.constant 0 : index
    %c0_7 = arith.constant 0 : index
    %8 = vector.load %arg3[%c0_6, %c0_7] : memref<2x1xf32, #tpu.memory_space<vmem>>, vector<2x1xf32>
    %9 = arith.addf %7, %8 : vector<2x1xf32>
    %cst_8 = arith.constant 0.000000e+00 : f32
    %10 = vector.broadcast %cst_8 : f32 to vector<2x1xf32>
    %11 = arith.subf %10, %9 : vector<2x1xf32>
    %12 = math.exp %11 : vector<2x1xf32>
    %cst_9 = arith.constant 1.000000e+00 : f32
    %13 = vector.broadcast %cst_9 : f32 to vector<2x1xf32>
    %14 = arith.addf %13, %12 : vector<2x1xf32>
    %cst_10 = arith.constant 1.000000e+00 : f32
    %15 = vector.broadcast %cst_10 : f32 to vector<2x1xf32>
    %16 = arith.divf %15, %14 : vector<2x1xf32>
    %17 = arith.mulf %9, %16 : vector<2x1xf32>
    %c0_11 = arith.constant 0 : index
    %c0_12 = arith.constant 0 : index
    %18 = vector.load %arg4[%c0_11, %c0_12] : memref<8x2xf32, #tpu.memory_space<vmem>>, vector<8x2xf32>
    %cst_13 = arith.constant dense<0.000000e+00> : vector<8x1xf32>
    %19 = tpu.matmul %18, %17, %cst_13 {dimension_numbers = #tpu.dot_dimension_numbers<[1], [0], [0], [1], [0, 0, 1, 1], [], []>} : vector<8x2xf32>, vector<2x1xf32>, vector<8x1xf32> -> vector<8x1xf32>
    %c0_14 = arith.constant 0 : index
    %c0_15 = arith.constant 0 : index
    %20 = vector.load %arg5[%c0_14, %c0_15] : memref<8x1xf32, #tpu.memory_space<vmem>>, vector<8x1xf32>
    %21 = arith.addf %19, %20 : vector<8x1xf32>
    %cst_16 = arith.constant 0.000000e+00 : f32
    %22 = vector.broadcast %cst_16 : f32 to vector<8x1xf32>
    %23 = arith.subf %22, %21 : vector<8x1xf32>
    %24 = math.exp %23 : vector<8x1xf32>
    %cst_17 = arith.constant 1.000000e+00 : f32
    %25 = vector.broadcast %cst_17 : f32 to vector<8x1xf32>
    %26 = arith.addf %25, %24 : vector<8x1xf32>
    %cst_18 = arith.constant 1.000000e+00 : f32
    %27 = vector.broadcast %cst_18 : f32 to vector<8x1xf32>
    %28 = arith.divf %27, %26 : vector<8x1xf32>
    %29 = vector.broadcast %28 : vector<8x1xf32> to vector<8x256xf32>
    %30 = arith.mulf %1, %29 : vector<8x256xf32>
    %c0_19 = arith.constant 0 : index
    %c0_20 = arith.constant 0 : index
    %c0_21 = arith.constant 0 : index
    %31 = vector.load %arg6[%c0_19, %c0_20, %c0_21] : memref<1x8x256xf32, #tpu.memory_space<vmem>>, vector<1x8x256xf32>
    %32 = vector.shape_cast %31 : vector<1x8x256xf32> to vector<8x256xf32>
    %33 = vector.shape_cast %30 : vector<8x256xf32> to vector<1x8x256xf32>
    tpu.vector_store %arg6[%c0_19, %c0_20, %c0_21], %33 {strides = array<i32>} : memref<1x8x256xf32, #tpu.memory_space<vmem>>, vector<1x8x256xf32>,
    return
  }
  func.func @transform_0(%arg0: i32) -> (i32, i32, i32) {
    %c0_i32 = arith.constant 0 : i32
    %c0_i32_0 = arith.constant 0 : i32
    %c0_i32_1 = arith.constant 0 : i32
    return %arg0, %c0_i32, %c0_i32_0 : i32, i32, i32
  }
  func.func @transform_1(%arg0: i32) -> (i32, i32) {
    %c0_i32 = arith.constant 0 : i32
    %c0_i32_0 = arith.constant 0 : i32
    %c0_i32_1 = arith.constant 0 : i32
    return %c0_i32, %c0_i32_0 : i32, i32
  }
  func.func @transform_2(%arg0: i32) -> (i32, i32) {
    %c0_i32 = arith.constant 0 : i32
    %c0_i32_0 = arith.constant 0 : i32
    %c0_i32_1 = arith.constant 0 : i32
    return %c0_i32, %c0_i32_0 : i32, i32
  }
  func.func @transform_3(%arg0: i32) -> (i32, i32) {
    %c0_i32 = arith.constant 0 : i32
    %c0_i32_0 = arith.constant 0 : i32
    %c0_i32_1 = arith.constant 0 : i32
    return %c0_i32, %c0_i32_0 : i32, i32
  }
  func.func @transform_4(%arg0: i32) -> (i32, i32) {
    %c0_i32 = arith.constant 0 : i32
    %c0_i32_0 = arith.constant 0 : i32
    %c0_i32_1 = arith.constant 0 : i32
    return %c0_i32, %c0_i32_0 : i32, i32
  }
  func.func @transform_5(%arg0: i32) -> (i32, i32, i32) {
    %c0_i32 = arith.constant 0 : i32
    %c0_i32_0 = arith.constant 0 : i32
    %c0_i32_1 = arith.constant 0 : i32
    return %arg0, %c0_i32, %c0_i32_0 : i32, i32, i32
  }
}

</mosaic_0001>

<bundles_post_ra>
// kernel: tpu_custom_call.1
= control target key start
LH: loop header
LB: loop body
LE: loop exit
PB: predicated region body
PF: predicated region fallthrough
CT: control target
= control target key end

     0   :  { %10 = vsyncpa [#allocation3], 0  ;;  %s912_s0 = inlined_call_operand.hbm [shape: f32[2,8,256], index: 0, kind: input, shape index: {}]   ;;  %s913_s1 = inlined_call_operand.vmem [shape: f32[2,8], index: 1, kind: input, shape index: {}]   ;;  %s914_s2 = inlined_call_operand.vmem [shape: f32[2,1], index: 2, kind: input, shape index: {}]   ;;  %s915_s3 = inlined_call_operand.vmem [shape: f32[8,2], index: 3, kind: input, shape index: {}]   ;;  %s916_s4 = inlined_call_operand.vmem [shape: f32[8,1], index: 4, kind: input, shape index: {}]   ;;  %s917_s5 = inlined_call_operand.hbm [shape: f32[2,8,256], index: 5, kind: output, shape index: {}]  }
   0x1   :  { %12 = vsyncpa [#allocation3 + $0x1], 0 }
   0x2   :  { %13 = vsyncpa [#allocation4], 0 }
   0x3   :  { %15 = vsyncpa [#allocation4 + $0x1], 0  ;;  %s735_s18 = smov 0   ;;  %s737_s19 = smov 0  }
   0x4   :  { %s739_s20 = smov 0   ;;  %s741_s21 = smov 0  }
   0x5 LB: > { %s756_s22 = sadd.s32 4294967295, %s698_s21   ;;  %s511_s23 = sadd.s32 4294967294, %s698_s21   ;;  %s698_s21 = sphi %s741_s21, %s932_s21   ;;  %s694_s20 = sphi %s739_s20, %s931_s20   ;;  %s690_s19 = sphi %s737_s19, %s930_s19   ;;  %s686_s18 = sphi %s735_s18, %s929_s18  }
   0x6   : > { %s760_s24 = sadd.s32 1, %s698_s21   ;;  %s28_s25 = sadd.s32 1, %s694_s20 }
   0x7   : > { %s25_s26 = ssub.s32 %s698_s21, %s760_s24  ;;  %p35_p0 = scmp.ne.s32.totalorder %s694_s20, %s690_s19 }
   0x8   : > { %p26_p1 = scmp.eq.s32.totalorder %s25_s26, 0  ;;  %p36_p2 = scmp.eq.s32.totalorder %s698_s21, 0 }
   0x9   : > { %p41_p3 = scmp.ne.s32.totalorder %s690_s19, %s686_s18  ;;  %p42_p4 = scmp.eq.s32.totalorder %s756_s22, 0 }
   0xa   : > { %s772_s27 = scalar_select %p26_p1, %s694_s20, %s28_s25  }
   0xb   : > { %p774_p5 = por %p36_p2, %p35_p0  ;;  %p778_p6 = por %p42_p4, %p41_p3 }
   0xc   : > { %p149_p7 = scmp.eq.s32.totalorder %s756_s22, 1  ;;  %p155_p8 = scmp.eq.s32.totalorder %s511_s23, 1 }
   0xd   : > { %p556_p10 = scmp.lt.s32.totalorder %s698_s21, 2  ;;  %s187_s7 = sand.u32 1, %s694_s20  }
   0xe   : > { %p785_p11 = por %p149_p7, %p35_p0  ;;  %p789_p12 = por %p155_p8, %p41_p3 }
   0xf   : > { %s528_s8 = sshll.u32 %s698_s21, 8  ;;  %s514_s9 = sshll.u32 %s187_s7, 4 }
  0x10   : > { %s921_s30 = scalar_select %p785_p11, 1, 0 }
  0x11   : > { %s922_s6 = scalar_select %p789_p12, 1, 0 }
  0x12   : > { %s798_s12 = scalar_lea.hbm %s912_s0, %s528_s8  ;;  %s191_s13 = scalar_lea.vmem [#allocation2], %s514_s9 }
  0x13   : > { %s199_s14 = sshll.u32 %s191_s13, 4  ;;  %p802_p13 = pnand %p556_p10, %p774_p5  ;;  %s806_s14 = int_to_ptr.vmem [resolvable:$true] %s199_s14 }
  0x14   : > { %s188_s16 = scalar_lea.sflag [#allocation3], %s187_s7  ;;  %s602_s17 = scalar_lea.hbm %s798_s12, 256 }
  0x15   : > { %p603_p2 = scmp.ne.s32.totalorder %s798_s12, %s602_s17  ;;  %p604_p3 = pneg %p802_p13 }
  0x16   : > { %s607_s26 = scalar_lea.hbm %s912_s0, 512  ;;  %p608_p5 = scmp.lt.u32.totalorder %s798_s12, %s912_s0 }
  0x17   : > { %p605_p4 = pnand %p604_p3, %p603_p2  ;;  %p609_p8 = scmp.lt.u32.totalorder %s607_s26, %s602_s17 }
  0x18   : > { %p611_p9 = scmp.lt.u32.totalorder %s602_s17, %s798_s12 }
  0x19   : > { %p606_p7 = pneg %p605_p4  ;;  %p610_p10 = por %p609_p8, %p608_p5 }
  0x1b   : > { %p612_p0 = por %p611_p9, %p610_p10 }
  0x1d   : > { %p613_p1 = pnand %p612_p0, %p606_p7 }
  0x1f   : > { %616 = shalt.err (!%p613_p1)
}
  0x20   : > { %s617_s7 = scalar_lea.vmem %s806_s14, 256  ;;  %s700_s9 = smov [#allocation2]  }
  0x21   : > { %p618_p2 = scmp.ne.s32.totalorder %s806_s14, %s617_s7  ;;  %s622_s10 = sshll.u32 %s700_s9, 4  ;;  %s623_s10 = int_to_ptr.vmem [resolvable:$false] %s622_s10 }
  0x22   : > { %s624_s11 = scalar_lea.vmem %s623_s10, 512  ;;  %p625_p11 = scmp.lt.s32.totalorder %s806_s14, %s623_s10 }
  0x23   : > { %p620_p4 = pnand %p618_p2, %p604_p3  ;;  %p626_p5 = scmp.lt.s32.totalorder %s624_s11, %s617_s7 }
  0x25   : > { %p621_p12 = pneg %p620_p4  ;;  %p627_p8 = por %p626_p5, %p625_p11 }
  0x27   : > { %p628_p9 = pnand %p627_p8, %p621_p12 }
  0x29   : > { %631 = shalt.err (!%p628_p9)
}
  0x2a   : > { %551 = dma.hbm_to_vmem [thread:$0]  (!%p802_p13), %s798_s12, 256, %s806_s14, %s188_s16  }
  0x2b   : > { %p924_p0 = scmp.lt.s32.totalorder %s698_s21, 3  ;;  %p925_p1 = scmp.ge.s32.totalorder %s698_s21, 1 }
  0x2d   : > { %p205_p3 = pnand %p925_p1, %p924_p0 }
  0x2e   : > { %s840_s13 = sand.u32 (!%p205_p3), 1, %s690_s19  }
  0x2f   : > { %208 = sbr.rel (%p205_p3) target bundleno = 834 (0x342), region = 40  ;;  %s518_s17 = sshll.u32 (!%p205_p3), %s840_s13, 4 }
  0x30   : > { %s211_s23 = scalar_lea.sflag (!%p205_p3), [#allocation3], %s840_s13  ;;  %s214_s15 = scalar_lea.vmem (!%p205_p3), [#allocation2], %s518_s17 }
  0x36   : > { %677 = dma.done.wait (%p778_p6), %s211_s23, 256  }
  0x37   : > { %679 = vsyncadd (%p778_p6), %s211_s23, 4294967040  ;;  %v241_v0 = vld [vmem:[%s214_s15] sm:$0xff]  ;;  %v242_v1 = vld [vmem:[%s214_s15 + $0x8] sm:$0xff]  ;;  %v701_v3 = vmov 0.0   ;;  %vm702_vm0 = vmmov 0   ;;  %vm250_vm1 = vcmask 64512  }
  0x38   : > { %v243_v2 = vadd.f32 %v242_v1, %v241_v0  ;;  %534 = vmatprep.subr.mxu0 %v701_v3  ;;  %539 = vmatprep.subr.mxu1 %v701_v3  ;;  %v248_v6 = vld [vmem:[%s913_s1] sm:$0x3]  ;;  %vm337_vm2 = vcmask 1041408   ;;  %vm333_vm3 = vcmask 15360   ;;  %v703_v18 = vmov 0   ;;  %s529_s7 = sshll.u32 %s756_s22, 8 }
  0x39   : > { %536 = vmatprep.mubr.msk.f32.mxu0 %vm702_vm0, %v701_v3  ;;  %541 = vmatprep.mubr.msk.f32.mxu1 %vm702_vm0, %v701_v3  ;;  %v249_v7 = vld [vmem:[%s914_s2] sm:$0x3]  ;;  %s240_s9 = scalar_lea.vmem [#allocation5], %s518_s17  ;;  %s868_s15 = scalar_lea.hbm %s917_s5, %s529_s7 }
  0x3a   : > { %244 = vadd.xlane.f32.xlu0 %v243_v2  ;;  %v331_v17 = vld [vmem:[%s915_s3] sm:$0xff]  ;;  %s441_s10 = sshll.u32 %s240_s9, 4  ;;  %s427_s12 = scalar_lea.sflag [#allocation4], %s840_s13  ;;  %s870_s10 = int_to_ptr.vmem [resolvable:$true] %s441_s10 }
  0x3b   : > { %593 = vset.pattern.permute.xlu0 %v703_v18  ;;  %v332_v19 = vld [vmem:[%s916_s4] sm:$0xff]  ;;  %s632_s22 = scalar_lea.vmem %s870_s10, 256  ;;  %p926_p11 = scmp.ne.s32.totalorder %s921_s30, 0 }
  0x3c   : > { %p633_p6 = scmp.ne.s32.totalorder %s870_s10, %s632_s22  ;;  %s704_s17 = smov [#allocation5]  }
  0x3d   : > { %s636_s14 = sshll.u32 %s704_s17, 4  ;;  %s637_s14 = int_to_ptr.vmem [resolvable:$false] %s636_s14 }
  0x3e   : > { %p634_p12 = pnand %p633_p6, %p926_p11  ;;  %s638_s29 = scalar_lea.vmem %s637_s14, 512 }
  0x3f   : > { %p639_p7 = scmp.lt.s32.totalorder %s870_s10, %s637_s14  ;;  %p640_p10 = scmp.lt.s32.totalorder %s638_s29, %s632_s22 }
  0x40   : > { %p635_p13 = pneg %p634_p12 }
  0x41   : > { %p641_p2 = por %p640_p10, %p639_p7 }
  0x43   : > { %p642_p4 = pnand %p641_p2, %p635_p13 }
  0xc7   : > { %v245_v4 = vpop.xlane.xlu0 %244 }
  0xc8   : > { %v247_v5 = vmul.f32 0.00390625, %v245_v4 }
  0xca   : > { %535 = vmatpush3.msra.mxu0 %v247_v5 }
  0xcb   : > { %537 = vmatmul.mubr.msk.f32.vlgmr.msra.gmra.mrb[0].mxu0 %vm250_vm1, %v248_v6 }
 0x19e   : > { %v320_v8 = vpop.f32.mrb[0].mxu0 }
 0x19f   : > { %v321_v9 = vadd.f32 %v320_v8, %v249_v7  ;;  %v538_v10 = vpop.f32.mrb[1].mxu0 }
 0x1a1   : > { %v324_v11 = vsub.f32 0.0, %v321_v9 }
 0x1a3   : > { %v325_v12 = vmul.f32 1.442695, %v324_v11 }
 0x1a5   : > { %594 = vpow2.f32 %v325_v12 }
 0x1af   : > { %v595_v13 = vpop.eup %594 }
 0x1b0   : > { %v327_v14 = vadd.f32 1.0, %v595_v13 }
 0x1b2   : > { %596 = vrcp.f32 %v327_v14 }
 0x1bc   : > { %v597_v15 = vpop.eup %596 }
 0x1bd   : > { %v330_v16 = vmul.f32 %v597_v15, %v321_v9 }
 0x1bf   : > { %540 = vmatpush3.msk.msra.mxu1 %vm337_vm2, %v330_v16 }
 0x1c0   : > { %542 = vmatmul.mubr.msk.f32.vlgmr.msra.gmra.mrb[0].mxu1 %vm333_vm3, %v331_v17 }
 0x293   : > { %v407_v20 = vpop.f32.mrb[0].mxu1 }
 0x294   : > { %v408_v21 = vadd.f32 %v407_v20, %v332_v19  ;;  %v543_v22 = vpop.f32.mrb[1].mxu1 }
 0x296   : > { %v411_v23 = vsub.f32 0.0, %v408_v21 }
 0x298   : > { %v412_v24 = vmul.f32 1.442695, %v411_v23 }
 0x29a   : > { %598 = vpow2.f32 %v412_v24 }
 0x2a4   : > { %v599_v25 = vpop.eup %598 }
 0x2a5   : > { %v414_v26 = vadd.f32 1.0, %v599_v25 }
 0x2a7   : > { %600 = vrcp.f32 %v414_v26 }
 0x2b1   : > { %v601_v27 = vpop.eup %600 }
 0x2b2   : > { %419 = vperm.xlu0 %593, %v601_v27  }
 0x331   : > { %v420_v28 = vpop.permute.xlu0 %419 }
 0x332   : > { %v422_v29 = vmul.f32 %v420_v28, %v241_v0  ;;  %v423_v30 = vmul.f32 %v420_v28, %v242_v1 }
 0x334   : > { %424 = vst [vmem:[%s240_s9] sm:$0xff] %v422_v29  ;;  %425 = vst [vmem:[%s240_s9 + $0x8] sm:$0xff] %v423_v30 }
 0x335   : > { %645 = shalt.err (!%p642_p4)
}
 0x336   : > { %s646_s13 = scalar_lea.hbm %s868_s15, 256  ;;  %s650_s26 = scalar_lea.hbm %s917_s5, 512 }
 0x337   : > { %p647_p5 = scmp.ne.s32.totalorder %s868_s15, %s646_s13  ;;  %p651_p0 = scmp.lt.u32.totalorder %s868_s15, %s917_s5 }
 0x338   : > { %p652_p1 = scmp.lt.u32.totalorder %s650_s26, %s646_s13  ;;  %p654_p6 = scmp.lt.u32.totalorder %s646_s13, %s868_s15 }
 0x339   : > { %p648_p8 = pnand %p647_p5, %p926_p11 }
 0x33a   : > { %p653_p3 = por %p652_p1, %p651_p0 }
 0x33b   : > { %p649_p9 = pneg %p648_p8 }
 0x33c   : > { %p655_p12 = por %p654_p6, %p653_p3 }
 0x33e   : > { %p656_p13 = pnand %p655_p12, %p649_p9 }
 0x340   : > { %659 = shalt.err (!%p656_p13)
}
 0x341   : > { %546 = dma.vmem_to_hbm [thread:$0]  (%p926_p11), %s870_s10, 256, %s868_s15, %s427_s12  }
 0x342 PF: > { %s453_s7 = sand.u32 1, %s686_s18   ;;  %p927_p7 = scmp.ne.s32.totalorder %s922_s6, 0 }
 0x343   : > { %p928_p10 = scmp.ge.s32.totalorder %s698_s21, 2  ;;  %s454_s9 = scalar_lea.sflag [#allocation4], %s453_s7 }
 0x345   : > { %p553_p2 = pnand %p928_p10, %p927_p7 }
 0x347   : > { %681 = dma.done.wait (!%p553_p2), %s454_s9, 256  }
 0x348   : > { %683 = vsyncadd (!%p553_p2), %s454_s9, 4294967040  ;;  %p18_p4 = scmp.ge.s32.totalorder %s760_s24, 4   ;;  %s929_s18 = smov %s690_s19 }
 0x349   : > { %s930_s19 = smov %s694_s20  ;;  %s931_s20 = smov %s772_s27 }
 0x34a   : > { %s932_s21 = smov %s760_s24  ;;  %20 = sbr.rel (!%p18_p4) target bundleno = 5 (0x5), region = 85 }
 0x351   :  { %459 = vsyncpa [#allocation3], 1 }
 0x352   :  { %461 = vsyncpa [#allocation3 + $0x1], 1 }
 0x353   :  { %462 = vsyncpa [#allocation4], 1 }
 0x354   :  { %464 = vsyncpa [#allocation4 + $0x1], 1 }

</bundles_post_ra>
